<compile_context>
chip_gen: v6e
topology: v6e:2x2x1
jax: 0.10.0
libtpu: 0.0.40
codegen_flags: <defaults>
</compile_context>

<pallas_src>
import numpy as np
import jax
import jax.numpy as jnp
from jax.experimental import pallas as pl
from jax.experimental.pallas import tpu as pltpu


def ct_kernel(w_ref, x_ref, bias_ref, o_ref):
    # w_ref:(C_out, C_in)  x_ref:(C_in, TP)  bias_ref:(C_out, 1)  o_ref:(C_out, TP)
    y = jnp.dot(w_ref[...], x_ref[...], preferred_element_type=jnp.float32)
    y = y + bias_ref[...]                                  # folded conv-bias + BN shift
    o_ref[...] = jnp.maximum(y, 0.0).astype(o_ref.dtype)   # ReLU


def _round_up(x, m):
    return ((x + m - 1) // m) * m


def _cdiv(a, b):
    return -(-a // b)


def _default_max_tile_p():
    """Lane-tile cap sized so the double-buffered working set fits the DEFAULT scoped
    VMEM of the current generation (no vmem_limit_bytes override needed):
      v6e / v7x (32 MiB default scoped): 8192 lanes  (~17.5 MB for C_in=200, C_out=64, f32)
      v5e & older (16 MiB default)      : 4096 lanes  (~8.7 MB)."""
    try:
        kind = jax.devices()[0].device_kind.lower()
    except Exception:
        return 4096
    if ("v6" in kind) or ("v7" in kind):
        return 8192
    return 4096


def channel_transformation(x_nchw, conv_w, conv_b, bn_gamma, bn_beta,
                           bn_mean, bn_var, eps=1e-5, max_tile_p=None,
                           compute_dtype=jnp.float32, out_dtype=jnp.float32):
    """x_nchw: (N, C_in, H, W); conv_w: (C_out, C_in, 1, 1).

    compute_dtype=jnp.bfloat16 halves x/w HBM traffic (mem-bound win) while keeping f32
    MXU accumulation and an f32 epilogue; default f32 to preserve strict tolerances.
    """
    N, C_in, H, W = x_nchw.shape
    C_out = conv_w.shape[0]
    P = H * W
    if max_tile_p is None:
        max_tile_p = _default_max_tile_p()

    # ---- fold BN (eval) + conv bias:  y = (W * s) @ x + ((b - mean) * s + beta) ----
    inv_std = 1.0 / jnp.sqrt(bn_var + eps)
    scale = bn_gamma * inv_std                                             # (C_out,)
    w_folded = (conv_w.reshape(C_out, C_in) * scale[:, None]).astype(compute_dtype)
    bias = ((conv_b - bn_mean) * scale + bn_beta).reshape(C_out, 1).astype(jnp.float32)

    # ---- free reshape (no transpose): NCHW is already channel-major per batch ----
    x3d = x_nchw.reshape(N, C_in, P).astype(compute_dtype)

    # ---- pick pixel (lane) tile ----
    pad_p = 0
    if P < 128:
        # tiny spatial case: pad the lane axis once to 128 so stores stay unmasked
        # (cost is negligible at this size).
        pad_p = 128 - P
        x3d = jnp.pad(x3d, ((0, 0), (0, 0), (0, pad_p)))
        P_lanes = 128
        tile_p = 128
    else:
        P_lanes = P
        if P <= max_tile_p:
            tile_p = P                          # full-extent block: any size allowed
        else:
            tile_p = (max_tile_p // 128) * 128  # lane-aligned big tile; ragged tail
                                                # handled by Pallas partial last block
    grid_j = _cdiv(P_lanes, tile_p)

    # ---- megacore: never leave a TensorCore idle on a 1-step grid (v7x: 2 TCs/chip) ----
    if N * grid_j == 1 and P_lanes >= 256:
        tile_p = _round_up(_cdiv(P_lanes, 2), 128)
        grid_j = _cdiv(P_lanes, tile_p)

    grid = (N, grid_j)

    in_itemsize = np.dtype(compute_dtype).itemsize
    out_itemsize = np.dtype(out_dtype).itemsize
    cost = pl.CostEstimate(
        flops=int(2 * N * P_lanes * C_in * C_out),
        transcendentals=0,
        bytes_accessed=int(N * P_lanes * (C_in * in_itemsize + C_out * out_itemsize)
                           + C_in * C_out * in_itemsize + C_out * 4),
    )

    out3d = pl.pallas_call(
        ct_kernel,
        out_shape=jax.ShapeDtypeStruct((N, C_out, P_lanes), out_dtype),
        grid_spec=pltpu.PrefetchScalarGridSpec(
            num_scalar_prefetch=0,
            grid=grid,
            in_specs=[
                pl.BlockSpec((C_out, C_in), lambda n, j: (0, 0)),             # folded weights (VMEM-resident)
                pl.BlockSpec((pl.Squeezed(), C_in, tile_p),
                             lambda n, j: (n, 0, j)),                         # x pixel tile
                pl.BlockSpec((C_out, 1), lambda n, j: (0, 0)),                # folded bias
            ],
            out_specs=pl.BlockSpec((pl.Squeezed(), C_out, tile_p),
                                   lambda n, j: (n, 0, j)),
        ),
        compiler_params=pltpu.CompilerParams(
            dimension_semantics=("parallel", "parallel")),
        cost_estimate=cost,
    )(w_folded, x3d, bias)

    if pad_p:
        out3d = out3d[:, :, :P]
    return out3d.reshape(N, C_out, H, W)        # free reshape, no transpose


def reference(x_nchw, conv_w, conv_b, bn_gamma, bn_beta, bn_mean, bn_var, eps=1e-5):
    # pure-JAX reference of Conv2d(1x1) + BatchNorm2d(eval) + ReLU
    y = jnp.einsum("nchw,oc->nohw", x_nchw, conv_w.reshape(conv_w.shape[0], -1))
    y = y + conv_b[None, :, None, None]
    y = (y - bn_mean[None, :, None, None]) / jnp.sqrt(bn_var + eps)[None, :, None, None]
    y = y * bn_gamma[None, :, None, None] + bn_beta[None, :, None, None]
    return jnp.maximum(y, 0.0)


if __name__ == "__main__":
    channel_hsi = 200   # matches the module's global
    channels = 64
    N, H, W = 2, 8, 8

    key = jax.random.PRNGKey(0)
    k_x, k_w, k_b, k_g, k_be, k_m, k_v = jax.random.split(key, 7)

    x = jax.random.normal(k_x, (N, channel_hsi, H, W), dtype=jnp.float32)
    conv_w = jax.random.normal(k_w, (channels, channel_hsi, 1, 1), dtype=jnp.float32) * 0.05
    conv_b = jax.random.normal(k_b, (channels,), dtype=jnp.float32) * 0.1
    bn_gamma = 1.0 + 0.1 * jax.random.normal(k_g, (channels,), dtype=jnp.float32)
    bn_beta = 0.1 * jax.random.normal(k_be, (channels,), dtype=jnp.float32)
    bn_mean = 0.1 * jax.random.normal(k_m, (channels,), dtype=jnp.float32)
    bn_var = jnp.abs(1.0 + 0.1 * jax.random.normal(k_v, (channels,), dtype=jnp.float32))

    out = channel_transformation(x, conv_w, conv_b, bn_gamma, bn_beta, bn_mean, bn_var)
    out = jax.block_until_ready(out)

    ref = reference(x, conv_w, conv_b, bn_gamma, bn_beta, bn_mean, bn_var)
    assert out.shape == (N, channels, H, W), out.shape
    assert jnp.allclose(out, ref, atol=1e-4, rtol=1e-4), float(jnp.max(jnp.abs(out - ref)))

    print("KERNEL_OK")
</pallas_src>

<mosaic_0001>
module attributes {stable_mosaic.version = 11 : i64} {
  func.func @ct_kernel(%arg0: i32, %arg1: i32, %arg2: memref<64x200xf32, #tpu.memory_space<vmem>>, %arg3: memref<1x200x128xf32, #tpu.memory_space<vmem>>, %arg4: memref<64x1xf32, #tpu.memory_space<vmem>>, %arg5: memref<1x64x128xf32, #tpu.memory_space<vmem>>) attributes {dimension_semantics = [#tpu.dimension_semantics<parallel>, #tpu.dimension_semantics<parallel>], iteration_bounds = array<i64: 2, 1>, scalar_prefetch = 0 : i64, scratch_operands = 0 : i64, tpu.core_type = #tpu.core_type<tc>, window_params = [{pipeline_mode = #tpu.pipeline_mode<synchronous>, transform_indices = @transform_0, window_bounds = array<i64: 64, 200>}, {transform_indices = @transform_1, window_bounds = array<i64: 1, 200, 128>}, {pipeline_mode = #tpu.pipeline_mode<synchronous>, transform_indices = @transform_2, window_bounds = array<i64: 64, 1>}, {transform_indices = @transform_3, window_bounds = array<i64: 1, 64, 128>}]} {
    %c0 = arith.constant 0 : index
    %c0_0 = arith.constant 0 : index
    %0 = vector.load %arg2[%c0, %c0_0] : memref<64x200xf32, #tpu.memory_space<vmem>>, vector<64x200xf32>
    %c0_1 = arith.constant 0 : index
    %c0_2 = arith.constant 0 : index
    %c0_3 = arith.constant 0 : index
    %1 = vector.load %arg3[%c0_1, %c0_2, %c0_3] : memref<1x200x128xf32, #tpu.memory_space<vmem>>, vector<1x200x128xf32>
    %2 = vector.shape_cast %1 : vector<1x200x128xf32> to vector<200x128xf32>
    %cst = arith.constant dense<0.000000e+00> : vector<64x128xf32>
    %3 = tpu.matmul %0, %2, %cst {dimension_numbers = #tpu.dot_dimension_numbers<[1], [0], [0], [1], [0, 0, 1, 1], [], []>} : vector<64x200xf32>, vector<200x128xf32>, vector<64x128xf32> -> vector<64x128xf32>
    %c0_4 = arith.constant 0 : index
    %c0_5 = arith.constant 0 : index
    %4 = vector.load %arg4[%c0_4, %c0_5] : memref<64x1xf32, #tpu.memory_space<vmem>>, vector<64x1xf32>
    %5 = vector.broadcast %4 : vector<64x1xf32> to vector<64x128xf32>
    %6 = arith.addf %3, %5 : vector<64x128xf32>
    %cst_6 = arith.constant 0.000000e+00 : f32
    %7 = vector.broadcast %cst_6 : f32 to vector<64x128xf32>
    %8 = arith.maximumf %6, %7 : vector<64x128xf32>
    %c0_7 = arith.constant 0 : index
    %c0_8 = arith.constant 0 : index
    %c0_9 = arith.constant 0 : index
    %9 = vector.load %arg5[%c0_7, %c0_8, %c0_9] : memref<1x64x128xf32, #tpu.memory_space<vmem>>, vector<1x64x128xf32>
    %10 = vector.shape_cast %9 : vector<1x64x128xf32> to vector<64x128xf32>
    %11 = vector.shape_cast %8 : vector<64x128xf32> to vector<1x64x128xf32>
    tpu.vector_store %arg5[%c0_7, %c0_8, %c0_9], %11 {strides = array<i32>} : memref<1x64x128xf32, #tpu.memory_space<vmem>>, vector<1x64x128xf32>,
    return
  }
  func.func @transform_0(%arg0: i32, %arg1: i32) -> (i32, i32) {
    %c0_i32 = arith.constant 0 : i32
    %c0_i32_0 = arith.constant 0 : i32
    %c0_i32_1 = arith.constant 0 : i32
    return %c0_i32, %c0_i32_0 : i32, i32
  }
  func.func @transform_1(%arg0: i32, %arg1: i32) -> (i32, i32, i32) {
    %c0_i32 = arith.constant 0 : i32
    %c0_i32_0 = arith.constant 0 : i32
    return %arg0, %c0_i32, %arg1 : i32, i32, i32
  }
  func.func @transform_2(%arg0: i32, %arg1: i32) -> (i32, i32) {
    %c0_i32 = arith.constant 0 : i32
    %c0_i32_0 = arith.constant 0 : i32
    %c0_i32_1 = arith.constant 0 : i32
    return %c0_i32, %c0_i32_0 : i32, i32
  }
  func.func @transform_3(%arg0: i32, %arg1: i32) -> (i32, i32, i32) {
    %c0_i32 = arith.constant 0 : i32
    %c0_i32_0 = arith.constant 0 : i32
    return %arg0, %c0_i32, %arg1 : i32, i32, i32
  }
}

</mosaic_0001>

<bundles_post_ra>
// kernel: tpu_custom_call.1
= control target key start
LH: loop header
LB: loop body
LE: loop exit
PB: predicated region body
PF: predicated region fallthrough
CT: control target
= control target key end

     0   :  { %8 = vsyncpa [#allocation3], 0  ;;  %s1194_s0 = inlined_call_operand.hbm [shape: f32[64,200], index: 0, kind: input, shape index: {}]   ;;  %s1195_s1 = inlined_call_operand.hbm [shape: f32[2,200,128], index: 1, kind: input, shape index: {}]   ;;  %s1196_s2 = inlined_call_operand.vmem [shape: f32[64,1], index: 2, kind: input, shape index: {}]   ;;  %s1197_s3 = inlined_call_operand.hbm [shape: f32[2,64,128], index: 3, kind: output, shape index: {}]  }
   0x1   :  { %9 = vsyncpa [#allocation6], 0 }
   0x2   :  { %11 = vsyncpa [#allocation6 + $0x1], 0 }
   0x3   :  { %12 = vsyncpa [#allocation4], 0 }
   0x4   :  { %14 = vsyncpa [#allocation4 + $0x1], 0  ;;  %s898_s12 = smov 0   ;;  %s900_s13 = smov 0  }
   0x5   :  { %s902_s14 = smov 0   ;;  %s904_s15 = smov 0  }
   0x6   :  { %s906_s16 = smov 0   ;;  %s908_s17 = smov 0  }
   0x7 LB: > { %s568_s18 = sadd.s32 4294967295, %s865_s17   ;;  %s569_s19 = sadd.s32 4294967294, %s865_s17   ;;  %s865_s17 = sphi %s908_s17, %s20_s17   ;;  %s861_s16 = sphi %s906_s16, %s1213_s16   ;;  %s857_s15 = sphi %s904_s15, %s1212_s15   ;;  %s853_s14 = sphi %s902_s14, %s1211_s14   ;;  %s849_s13 = sphi %s900_s13, %s1210_s13   ;;  %s845_s12 = sphi %s898_s12, %s1209_s12  }
   0x8   : > { %p75_p0 = scmp.ne.s32.totalorder %s849_s13, %s845_s12  ;;  %p932_p1 = scmp.eq.s32.totalorder %s568_s18, 0 }
   0x9   : > { %p936_p2 = scmp.eq.s32.totalorder %s568_s18, 1  ;;  %p128_p3 = scmp.eq.s32.totalorder %s569_s19, 1 }
   0xa   : > { %p942_p4 = por %p932_p1, %p75_p0  ;;  %p570_p5 = scmp.ge.s32.totalorder %s865_s17, 1 }
   0xb   : > { %p947_p6 = por %p128_p3, %p75_p0  ;;  %p135_p7 = scmp.lt.s32.totalorder %s865_s17, 3 }
   0xc   : > { %s1201_s22 = scalar_select %p942_p4, 1, 0 }
   0xd   : > { %s1202_s23 = scalar_select %p947_p6, 1, 0 }
   0xe   : > { %p952_p8 = pnand %p570_p5, %p135_p7  ;;  %s867_s25 = smov [#allocation2]  }
   0xf   : > { %s147_s26 = sshll.u32 %s867_s25, 4  ;;  %p572_p10 = scmp.ge.s32.totalorder %s865_s17, 2  ;;  %s148_s26 = int_to_ptr.vmem [resolvable:$true] %s147_s26 }
  0x10   : > { %p652_p9 = pneg %p952_p8  ;;  %s32_s28 = sadd.s32 1, %s861_s16 }
  0x11   : > { %s738_s29 = scalar_lea.vmem %s148_s26, 2048  ;;  %p746_p5 = scmp.lt.s32.totalorder %s148_s26, %s148_s26 }
  0x12   : > { %p961_p11 = pnand %p652_p9, %p932_p1  ;;  %p739_p13 = scmp.ne.s32.totalorder %s148_s26, %s738_s29 }
  0x13   : > { %p747_p7 = scmp.lt.s32.totalorder %s738_s29, %s738_s29 }
  0x14   : > { %p729_p12 = pneg %p961_p11 }
  0x15   : > { %p748_p6 = por %p747_p7, %p746_p5 }
  0x16   : > { %p741_p0 = pnand %p739_p13, %p729_p12 }
  0x18   : > { %p742_p3 = pneg %p741_p0 }
  0x1a   : > { %p749_p4 = pnand %p748_p6, %p742_p3 }
  0x1c   : > { %752 = shalt.err (!%p749_p4)
}
  0x1d   : > { %s868_s30 = smov 256   ;;  %s869_s4 = smov 16  }
  0x1e   : > { %655 = dma.hbm_to_vmem [thread:$0]  (!%p961_p11), %s1194_s0, 2048, %s148_s26, [#allocation3], %s868_s30, %s868_s30, %s869_s4  }
  0x1f   : > { %p34_p6 = scmp.ge.s32.totalorder %s32_s28, 2  ;;  %s62_s7 = sadd.s32 1, %s853_s14 }
  0x20   : > { %p69_p4 = scmp.ne.s32.totalorder %s853_s14, %s849_s13  ;;  %p70_p9 = scmp.eq.s32.totalorder %s865_s17, 0 }
  0x21   : > { %s1215_s28 = smov (%p34_p6, %s32_s28), 0  ;;  %p665_p0 = scmp.lt.s32.totalorder %s865_s17, 2 }
  0x22   : > { %p71_p12 = por %p70_p9, %p69_p4  ;;  %p981_p13 = por %p936_p2, %p69_p4 }
  0x23   : > { %s57_s9 = ssub.s32 %s861_s16, %s1215_s28  ;;  %s164_s10 = sand.u32 1, %s853_s14  }
  0x24   : > { %p60_p3 = scmp.eq.s32.totalorder %s57_s9, 0  ;;  %s641_s11 = smul.u32 200, %s164_s10 }
  0x25   : > { %s642_s19 = smul.u32 3200, %s861_s16  ;;  %p993_p11 = pnand %p665_p0, %p71_p12 }
  0x26   : > { %s990_s18 = scalar_select %p60_p3, %s853_s14, %s62_s7  }
  0x27   : > { %s168_s25 = scalar_lea.vmem [#allocation5], %s641_s11  ;;  %s175_s30 = scalar_lea.hbm %s1195_s1, %s642_s19 }
  0x28   : > { %s176_s26 = sshll.u32 %s168_s25, 4  ;;  %s165_s4 = scalar_lea.sflag [#allocation6], %s164_s10  ;;  %s177_s26 = int_to_ptr.vmem [resolvable:$true] %s176_s26 }
  0x29   : > { %p755_p2 = pneg %p993_p11  ;;  %s766_s5 = scalar_lea.vmem %s177_s26, 3200 }
  0x2a   : > { %p767_p5 = scmp.ne.s32.totalorder %s177_s26, %s766_s5  ;;  %s870_s6 = smov [#allocation5]  }
  0x2b   : > { %s771_s7 = sshll.u32 %s870_s6, 4  ;;  %s772_s7 = int_to_ptr.vmem [resolvable:$false] %s771_s7 }
  0x2c   : > { %p769_p7 = pnand %p767_p5, %p755_p2  ;;  %s773_s9 = scalar_lea.vmem %s772_s7, 6400 }
  0x2d   : > { %p774_p4 = scmp.lt.s32.totalorder %s177_s26, %s772_s7  ;;  %p775_p9 = scmp.lt.s32.totalorder %s773_s9, %s766_s5 }
  0x2e   : > { %p770_p6 = pneg %p769_p7 }
  0x2f   : > { %p776_p12 = por %p775_p9, %p774_p4 }
  0x31   : > { %p777_p0 = pnand %p776_p12, %p770_p6 }
  0x33   : > { %780 = shalt.err (!%p777_p0)
}
  0x34   : > { %s871_s11 = smov 128   ;;  %s872_s19 = smov 8  }
  0x35   : > { %659 = dma.hbm_to_vmem [thread:$0]  (!%p993_p11), %s175_s30, 3200, %s177_s26, %s165_s4, %s871_s11, %s871_s11, %s872_s19  }
  0x36   : > { %188 = sbr.rel (%p952_p8) target bundleno = 341 (0x155), region = 32 }
  0x3b   : > { %832 = dma.done.wait (%p932_p1), [#allocation3], 2048  }
  0x3c   : > { %834 = vsyncadd (%p932_p1), [#allocation3], 4294965248  ;;  %s1011_s10 = sand.u32 1, %s849_s13   ;;  %p1207_p3 = scmp.ne.s32.totalorder %s1201_s22, 0 }
  0x3d   : > { %s643_s25 = smul.u32 200, %s1011_s10  ;;  %s195_s29 = scalar_lea.sflag [#allocation6], %s1011_s10 }
  0x3f   : > { %s1015_s21 = scalar_lea.vmem [#allocation5], %s643_s25 }
  0x40   : > { %836 = dma.done.wait (%p1207_p3), %s195_s29, 3200  }
  0x41   : > { %838 = vsyncadd (%p1207_p3), %s195_s29, 4294964096  ;;  %v873_v0 = vmov 0.0   ;;  %v874_v1 = vmov 0   ;;  %v252_v2 = vld [vmem:[%s1015_s21 + $0x78] sm:$0xff]  ;;  %v251_v3 = vld [vmem:[%s1015_s21 + $0x70] sm:$0xff]  ;;  %vm310_vm0 = vcmask 588800  }
  0x42   : > { %335 = vmatprep.subr.mxu0 %v873_v0  ;;  %591 = vmatprep.subr.mxu1 %v873_v0  ;;  %v250_v4 = vld [vmem:[%s1015_s21 + $0x68] sm:$0xff]  ;;  %v249_v5 = vld [vmem:[%s1015_s21 + $0x60] sm:$0xff]  ;;  %v248_v6 = vld [vmem:[%s1015_s21 + $0x58] sm:$0xff]  ;;  %s576_s20 = sshll.u32 %s1011_s10, 6  ;;  %s590_s26 = sshll.u32 %s857_s15, 10 }
  0x43   : > { %726 = vset.pattern.permute.xlu1 %v874_v1  ;;  %725 = vset.pattern.permute.xlu0 %v874_v1  ;;  %v247_v7 = vld [vmem:[%s1015_s21 + $0x50] sm:$0xff]  ;;  %v246_v8 = vld [vmem:[%s1015_s21 + $0x48] sm:$0xff]  ;;  %v245_v9 = vld [vmem:[%s1015_s21 + $0x40] sm:$0xff]  ;;  %s1129_s22 = scalar_lea.vmem [#allocation7], %s576_s20  ;;  %s1144_s4 = scalar_lea.hbm %s1197_s3, %s590_s26 }
  0x44   : > { %336 = vmatpush1.msra.mxu0 %v252_v2  ;;  %616 = vmatpush1.msra.mxu1 %v252_v2  ;;  %v244_v10 = vld [vmem:[%s1015_s21 + $0x38] sm:$0xff]  ;;  %v243_v11 = vld [vmem:[%s1015_s21 + $0x30] sm:$0xff]  ;;  %v242_v12 = vld [vmem:[%s1015_s21 + $0x28] sm:$0xff]  ;;  %s471_s24 = sshll.u32 %s1129_s22, 4  ;;  %s457_s15 = scalar_lea.sflag [#allocation4], %s1011_s10  ;;  %s1137_s24 = int_to_ptr.vmem [resolvable:$true] %s471_s24 }
  0x45   : > { %337 = vmatprep.subr.mxu0 %v873_v0  ;;  %592 = vmatprep.subr.mxu1 %v873_v0  ;;  %v241_v13 = vld [vmem:[%s1015_s21 + $0x20] sm:$0xff]  ;;  %v240_v14 = vld [vmem:[%s1015_s21 + $0x18] sm:$0xff]  ;;  %v239_v15 = vld [vmem:[%s1015_s21 + $0x10] sm:$0xff]  ;;  %s781_s5 = scalar_lea.vmem %s1137_s24, 1024  ;;  %s875_s6 = smov [#allocation7]  }
  0x46   : > { %338 = vmatpush1.msra.mxu0 %v251_v3  ;;  %617 = vmatpush1.msra.mxu1 %v251_v3  ;;  %v238_v16 = vld [vmem:[%s1015_s21 + $0x8] sm:$0xff]  ;;  %v237_v17 = vld [vmem:[%s1015_s21] sm:$0xff]  ;;  %v260_v19 = vld [vmem:[%s1015_s21 + $0xb8] sm:$0xff]  ;;  %p782_p1 = scmp.ne.s32.totalorder %s1137_s24, %s781_s5  ;;  %s785_s7 = sshll.u32 %s875_s6, 4  ;;  %s786_s7 = int_to_ptr.vmem [resolvable:$false] %s785_s7 }
  0x47   : > { %339 = vmatprep.subr.mxu0 %v873_v0  ;;  %593 = vmatprep.subr.mxu1 %v873_v0  ;;  %v261_v18 = vld [vmem:[%s1015_s21 + $0xc0] sm:$0xff]  ;;  %v259_v20 = vld [vmem:[%s1015_s21 + $0xb0] sm:$0xff]  ;;  %v258_v21 = vld [vmem:[%s1015_s21 + $0xa8] sm:$0xff]  ;;  %s787_s9 = scalar_lea.vmem %s786_s7, 2048  ;;  %p788_p2 = scmp.lt.s32.totalorder %s1137_s24, %s786_s7 }
  0x48   : > { %340 = vmatpush1.msra.mxu0 %v250_v4  ;;  %618 = vmatpush1.msra.mxu1 %v250_v4  ;;  %v257_v22 = vld [vmem:[%s1015_s21 + $0xa0] sm:$0xff]  ;;  %v256_v23 = vld [vmem:[%s1015_s21 + $0x98] sm:$0xff]  ;;  %v255_v24 = vld [vmem:[%s1015_s21 + $0x90] sm:$0xff]  ;;  %p783_p8 = pnand %p782_p1, %p981_p13  ;;  %p789_p5 = scmp.lt.s32.totalorder %s787_s9, %s781_s5 }
  0x49   : > { %341 = vmatprep.subr.mxu0 %v873_v0  ;;  %594 = vmatprep.subr.mxu1 %v873_v0  ;;  %v254_v25 = vld [vmem:[%s1015_s21 + $0x88] sm:$0xff]  ;;  %v253_v26 = vld [vmem:[%s1015_s21 + $0x80] sm:$0xff]  ;;  %v224_v31 = vld [vmem:[#allocation2 + $0x18] sm:$0xff] }
  0x4a   : > { %342 = vmatpush1.msra.mxu0 %v249_v5  ;;  %619 = vmatpush1.msra.mxu1 %v249_v5  ;;  %v222_v27 = vld [vmem:[#allocation2 + $0x8] sm:$0xff]  ;;  %v221_v29 = vld [vmem:[#allocation2] sm:$0xff]  ;;  %v232_v32 = vld [vmem:[#allocation2 + $0x58] sm:$0xff]  ;;  %p784_p11 = pneg %p783_p8  ;;  %p790_p7 = por %p789_p5, %p788_p2 }
  0x4b   : > { %343 = vmatprep.subr.mxu0 %v873_v0  ;;  %595 = vmatprep.subr.mxu1 %v873_v0  ;;  %v230_v28 = vld [vmem:[#allocation2 + $0x48] sm:$0xff]  ;;  %v229_v30 = vld [vmem:[#allocation2 + $0x40] sm:$0xff]  ;;  %v264_v33 = vld [vmem:[%s1196_s2 + $0x10] sm:$0xff] }
  0x4c   : > { %344 = vmatpush1.msra.mxu0 %v248_v6  ;;  %620 = vmatpush1.msra.mxu1 %v248_v6  ;;  %v262_v34 = vld [vmem:[%s1196_s2] sm:$0xff]  ;;  %v223_v35 = vld [vmem:[#allocation2 + $0x10] sm:$0xff]  ;;  %v226_v37 = vld [vmem:[#allocation2 + $0x28] sm:$0xff]  ;;  %p791_p6 = pnand %p790_p7, %p784_p11 }
  0x4d   : > { %345 = vmatprep.subr.mxu0 %v873_v0  ;;  %596 = vmatprep.subr.mxu1 %v873_v0  ;;  %v231_v36 = vld [vmem:[#allocation2 + $0x50] sm:$0xff]  ;;  %v234_v38 = vld [vmem:[#allocation2 + $0x68] sm:$0xff]  ;;  %v265_v39 = vld [vmem:[%s1196_s2 + $0x18] sm:$0xff] }
  0x4e   : > { %346 = vmatpush1.msra.mxu0 %v247_v7  ;;  %621 = vmatpush1.msra.mxu1 %v247_v7  ;;  %v263_v40 = vld [vmem:[%s1196_s2 + $0x8] sm:$0xff]  ;;  %v225_v41 = vld [vmem:[#allocation2 + $0x20] sm:$0xff]  ;;  %v228_v43 = vld [vmem:[#allocation2 + $0x38] sm:$0xff] }
  0x4f   : > { %347 = vmatprep.subr.mxu0 %v873_v0  ;;  %597 = vmatprep.subr.mxu1 %v873_v0  ;;  %v233_v42 = vld [vmem:[#allocation2 + $0x60] sm:$0xff]  ;;  %v236_v44 = vld [vmem:[#allocation2 + $0x78] sm:$0xff]  ;;  %v267_v45 = vld [vmem:[%s1196_s2 + $0x28] sm:$0xff] }
  0x50   : > { %348 = vmatpush1.msra.mxu0 %v246_v8  ;;  %622 = vmatpush1.msra.mxu1 %v246_v8  ;;  %v266_v46 = vld [vmem:[%s1196_s2 + $0x20] sm:$0xff]  ;;  %v227_v47 = vld [vmem:[#allocation2 + $0x30] sm:$0xff]  ;;  %v269_v49 = vld [vmem:[%s1196_s2 + $0x38] sm:$0xff] }
  0x51   : > { %349 = vmatprep.subr.mxu0 %v873_v0  ;;  %598 = vmatprep.subr.mxu1 %v873_v0  ;;  %v235_v48 = vld [vmem:[#allocation2 + $0x70] sm:$0xff] }
  0x52   : > { %350 = vmatpush1.msra.mxu0 %v245_v9  ;;  %623 = vmatpush1.msra.mxu1 %v245_v9  ;;  %v268_v50 = vld [vmem:[%s1196_s2 + $0x30] sm:$0xff] }
  0x53   : > { %351 = vmatprep.subr.mxu0 %v873_v0  ;;  %599 = vmatprep.subr.mxu1 %v873_v0 }
  0x54   : > { %352 = vmatpush1.msra.mxu0 %v244_v10  ;;  %624 = vmatpush1.msra.mxu1 %v244_v10 }
  0x55   : > { %353 = vmatprep.subr.mxu0 %v873_v0  ;;  %600 = vmatprep.subr.mxu1 %v873_v0 }
  0x56   : > { %354 = vmatpush1.msra.mxu0 %v243_v11  ;;  %625 = vmatpush1.msra.mxu1 %v243_v11 }
  0x57   : > { %355 = vmatprep.subr.mxu0 %v873_v0  ;;  %601 = vmatprep.subr.mxu1 %v873_v0 }
  0x58   : > { %356 = vmatpush1.msra.mxu0 %v242_v12  ;;  %626 = vmatpush1.msra.mxu1 %v242_v12 }
  0x59   : > { %357 = vmatprep.subr.mxu0 %v873_v0  ;;  %602 = vmatprep.subr.mxu1 %v873_v0 }
  0x5a   : > { %358 = vmatpush1.msra.mxu0 %v241_v13  ;;  %627 = vmatpush1.msra.mxu1 %v241_v13 }
  0x5b   : > { %359 = vmatprep.subr.mxu0 %v873_v0  ;;  %603 = vmatprep.subr.mxu1 %v873_v0 }
  0x5c   : > { %360 = vmatpush1.msra.mxu0 %v240_v14  ;;  %628 = vmatpush1.msra.mxu1 %v240_v14 }
  0x5d   : > { %361 = vmatprep.subr.mxu0 %v873_v0  ;;  %604 = vmatprep.subr.mxu1 %v873_v0 }
  0x5e   : > { %362 = vmatpush1.msra.mxu0 %v239_v15  ;;  %629 = vmatpush1.msra.mxu1 %v239_v15 }
  0x5f   : > { %363 = vmatprep.subr.mxu0 %v873_v0  ;;  %605 = vmatprep.subr.mxu1 %v873_v0 }
  0x60   : > { %364 = vmatpush1.msra.mxu0 %v238_v16  ;;  %630 = vmatpush1.msra.mxu1 %v238_v16 }
  0x61   : > { %365 = vmatprep.subr.mxu0 %v873_v0  ;;  %606 = vmatprep.subr.mxu1 %v873_v0 }
  0x62   : > { %366 = vmatpush1.msra.mxu0 %v237_v17  ;;  %631 = vmatpush1.msra.mxu1 %v237_v17 }
  0x63   : > { %381 = vmatprep.subr.mxu0 %v873_v0  ;;  %607 = vmatprep.subr.mxu1 %v873_v0 }
  0x64   : > { %382 = vmatpush2.msra.mxu0 %v261_v18  ;;  %632 = vmatpush2.msra.mxu1 %v261_v18 }
  0x65   : > { %383 = vmatprep.subr.mxu0 %v873_v0  ;;  %608 = vmatprep.subr.mxu1 %v873_v0 }
  0x66   : > { %384 = vmatpush2.msra.mxu0 %v260_v19  ;;  %633 = vmatpush2.msra.mxu1 %v260_v19 }
  0x67   : > { %385 = vmatprep.subr.mxu0 %v873_v0  ;;  %609 = vmatprep.subr.mxu1 %v873_v0 }
  0x68   : > { %386 = vmatpush2.msra.mxu0 %v259_v20  ;;  %634 = vmatpush2.msra.mxu1 %v259_v20 }
  0x69   : > { %387 = vmatprep.subr.mxu0 %v873_v0  ;;  %610 = vmatprep.subr.mxu1 %v873_v0 }
  0x6a   : > { %388 = vmatpush2.msra.mxu0 %v258_v21  ;;  %635 = vmatpush2.msra.mxu1 %v258_v21 }
  0x6b   : > { %389 = vmatprep.subr.mxu0 %v873_v0  ;;  %611 = vmatprep.subr.mxu1 %v873_v0 }
  0x6c   : > { %390 = vmatpush2.msra.mxu0 %v257_v22  ;;  %636 = vmatpush2.msra.mxu1 %v257_v22 }
  0x6d   : > { %391 = vmatprep.subr.mxu0 %v873_v0  ;;  %612 = vmatprep.subr.mxu1 %v873_v0 }
  0x6e   : > { %392 = vmatpush2.msra.mxu0 %v256_v23  ;;  %637 = vmatpush2.msra.mxu1 %v256_v23 }
  0x6f   : > { %393 = vmatprep.subr.mxu0 %v873_v0  ;;  %613 = vmatprep.subr.mxu1 %v873_v0 }
  0x70   : > { %394 = vmatpush2.msra.mxu0 %v255_v24  ;;  %638 = vmatpush2.msra.mxu1 %v255_v24 }
  0x71   : > { %395 = vmatprep.subr.mxu0 %v873_v0  ;;  %614 = vmatprep.subr.mxu1 %v873_v0 }
  0x72   : > { %396 = vmatpush2.msra.mxu0 %v254_v25  ;;  %639 = vmatpush2.msra.mxu1 %v254_v25 }
  0x73   : > { %397 = vmatprep.subr.mxu0 %v873_v0  ;;  %615 = vmatprep.subr.mxu1 %v873_v0 }
  0x74   : > { %398 = vmatpush2.msra.mxu0 %v253_v26  ;;  %640 = vmatpush2.msra.mxu1 %v253_v26 }
  0x75   : > { %577 = vmatprep.mubr.msk.f32.mxu0 %vm310_vm0, %v222_v27  ;;  %581 = vmatprep.mubr.msk.f32.mxu1 %vm310_vm0, %v230_v28 }
  0x76   : > { %400 = vmatmul.mubr.f32.vlgmr.msra.gmra.mxu0 %v221_v29  ;;  %420 = vmatmul.mubr.f32.vlgmr.msra.gmra.mxu1 %v229_v30 }
  0x77   : > { %578 = vmatprep.mubr.msk.f32.mxu0 %vm310_vm0, %v224_v31  ;;  %582 = vmatprep.mubr.msk.f32.mxu1 %vm310_vm0, %v232_v32 }
  0x78   : > { %282 = vperm.xlu1 %726, %v264_v33   ;;  %272 = vperm.xlu0 %725, %v262_v34  }
  0x7a   : > { %405 = vmatmul.mubr.f32.gmra.mxu0 %v223_v35  ;;  %425 = vmatmul.mubr.f32.gmra.mxu1 %v231_v36 }
  0x7b   : > { %579 = vmatprep.mubr.msk.f32.mxu0 %vm310_vm0, %v226_v37  ;;  %583 = vmatprep.mubr.msk.f32.mxu1 %vm310_vm0, %v234_v38 }
  0x7c   : > { %287 = vperm.xlu1 %726, %v265_v39   ;;  %277 = vperm.xlu0 %725, %v263_v40  }
  0x7e   : > { %410 = vmatmul.mubr.f32.gmra.mxu0 %v225_v41  ;;  %430 = vmatmul.mubr.f32.gmra.mxu1 %v233_v42 }
  0x7f   : > { %580 = vmatprep.mubr.msk.f32.mxu0 %vm310_vm0, %v228_v43  ;;  %584 = vmatprep.mubr.msk.f32.mxu1 %vm310_vm0, %v236_v44 }
  0x80   : > { %297 = vperm.xlu1 %726, %v267_v45   ;;  %292 = vperm.xlu0 %725, %v266_v46  }
  0x82   : > { %415 = vmatmul.mubr.f32.gmra.mxu0 %v227_v47  ;;  %435 = vmatmul.mubr.f32.gmra.mxu1 %v235_v48 }
  0x84   : > { %307 = vperm.xlu1 %726, %v269_v49   ;;  %302 = vperm.xlu0 %725, %v268_v50  }
  0xf3   : > { %v273_v51 = vpop.permute.xlu0 %272  ;;  %v283_v52 = vpop.permute.xlu1 %282 }
  0xf7   : > { %v278_v53 = vpop.permute.xlu0 %277  ;;  %v288_v54 = vpop.permute.xlu1 %287 }
  0xfb   : > { %v293_v55 = vpop.permute.xlu0 %292  ;;  %v298_v62 = vpop.permute.xlu1 %297 }
  0xff   : > { %v303_v7 = vpop.permute.xlu0 %302  ;;  %v308_v16 = vpop.permute.xlu1 %307 }
 0x136   : > { %v401_v56 = vpop.f32.mrf.mxu0  ;;  %v421_v57 = vpop.f32.mrf.mxu1 }
 0x137   : > { %v402_v58 = vadd.f32 %v401_v56, %v273_v51  ;;  %v422_v59 = vadd.f32 %v421_v57, %v293_v55 }
 0x138   : > { %v403_v60 = vpop.f32.mrf.mxu0  ;;  %v423_v61 = vpop.f32.mrf.mxu1 }
 0x139   : > { %v440_v63 = vmax.f32 %v402_v58, 0.0  ;;  %v444_v0 = vmax.f32 %v422_v59, 0.0 }
 0x13a   : > { %v406_v1 = vpop.f32.mrf.mxu0  ;;  %v426_v2 = vpop.f32.mrf.mxu1 }
 0x13b   : > { %448 = vst [vmem:[%s1129_s22] sm:$0xff] %v440_v63  ;;  %452 = vst [vmem:[%s1129_s22 + $0x20] sm:$0xff] %v444_v0  ;;  %v407_v3 = vadd.f32 %v406_v1, %v278_v53  ;;  %v427_v4 = vadd.f32 %v426_v2, %v298_v62 }
 0x13c   : > { %v408_v5 = vpop.f32.mrf.mxu0  ;;  %v428_v6 = vpop.f32.mrf.mxu1 }
 0x13d   : > { %v441_v8 = vmax.f32 %v407_v3, 0.0  ;;  %v445_v9 = vmax.f32 %v427_v4, 0.0 }
 0x13e   : > { %v411_v10 = vpop.f32.mrf.mxu0  ;;  %v431_v11 = vpop.f32.mrf.mxu1 }
 0x13f   : > { %449 = vst [vmem:[%s1129_s22 + $0x8] sm:$0xff] %v441_v8  ;;  %453 = vst [vmem:[%s1129_s22 + $0x28] sm:$0xff] %v445_v9  ;;  %v412_v12 = vadd.f32 %v411_v10, %v283_v52  ;;  %v432_v13 = vadd.f32 %v431_v11, %v303_v7 }
 0x140   : > { %v413_v14 = vpop.f32.mrf.mxu0  ;;  %v433_v15 = vpop.f32.mrf.mxu1 }
 0x141   : > { %v442_v17 = vmax.f32 %v412_v12, 0.0  ;;  %v446_v18 = vmax.f32 %v432_v13, 0.0 }
 0x142   : > { %v416_v19 = vpop.f32.mrf.mxu0  ;;  %v436_v20 = vpop.f32.mrf.mxu1 }
 0x143   : > { %450 = vst [vmem:[%s1129_s22 + $0x10] sm:$0xff] %v442_v17  ;;  %454 = vst [vmem:[%s1129_s22 + $0x30] sm:$0xff] %v446_v18  ;;  %v417_v21 = vadd.f32 %v416_v19, %v288_v54  ;;  %v437_v22 = vadd.f32 %v436_v20, %v308_v16 }
 0x144   : > { %v418_v23 = vpop.f32.mrf.mxu0  ;;  %v438_v24 = vpop.f32.mrf.mxu1 }
 0x145   : > { %v443_v25 = vmax.f32 %v417_v21, 0.0  ;;  %v447_v26 = vmax.f32 %v437_v22, 0.0 }
 0x147   : > { %451 = vst [vmem:[%s1129_s22 + $0x18] sm:$0xff] %v443_v25  ;;  %455 = vst [vmem:[%s1129_s22 + $0x38] sm:$0xff] %v447_v26 }
 0x148   : > { %794 = shalt.err (!%p791_p6)
}
 0x149   : > { %s795_s11 = scalar_lea.hbm %s1144_s4, 1024  ;;  %s799_s29 = scalar_lea.hbm %s1197_s3, 2048 }
 0x14a   : > { %p796_p4 = scmp.ne.s32.totalorder %s1144_s4, %s795_s11  ;;  %p800_p0 = scmp.lt.s32.totalorder %s1144_s4, %s1197_s3 }
 0x14b   : > { %p801_p3 = scmp.lt.s32.totalorder %s799_s29, %s795_s11 }
 0x14c   : > { %p797_p9 = pnand %p796_p4, %p981_p13 }
 0x14d   : > { %p802_p1 = por %p801_p3, %p800_p0 }
 0x14e   : > { %p798_p12 = pneg %p797_p9 }
 0x150   : > { %p803_p8 = pnand %p802_p1, %p798_p12 }
 0x152   : > { %806 = shalt.err (!%p803_p8)
}
 0x153   : > { %s876_s22 = smov 128   ;;  %s877_s26 = smov 8  }
 0x154   : > { %650 = dma.vmem_to_hbm [thread:$0]  (%p981_p13), %s1137_s24, 1024, %s1144_s4, %s457_s15, %s876_s22, %s876_s22, %s877_s26  }
 0x155 PF: > { %s486_s27 = sand.u32 1, %s845_s12   ;;  %p1208_p11 = scmp.ne.s32.totalorder %s1202_s23, 0 }
 0x156   : > { %s487_s30 = scalar_lea.sflag [#allocation4], %s486_s27 }
 0x157   : > { %p661_p2 = pnand %p572_p10, %p1208_p11 }
 0x159   : > { %p662_p5 = pneg %p661_p2 }
 0x15b   : > { %840 = dma.done.wait (%p662_p5), %s487_s30, 1024  }
 0x15c   : > { %842 = vsyncadd (%p662_p5), %s487_s30, 4294966272  ;;  %s20_s17 = sadd.s32 1, %s865_s17   ;;  %s1209_s12 = smov %s849_s13 }
 0x15d   : > { %p17_p7 = scmp.ge.s32.totalorder %s20_s17, 4   ;;  %s1210_s13 = smov %s853_s14 }
 0x15e   : > { %s1211_s14 = smov %s990_s18  ;;  %s1212_s15 = smov %s861_s16 }
 0x15f   : > { %s1213_s16 = smov %s1215_s28  ;;  %19 = sbr.rel (!%p17_p7) target bundleno = 7 (0x7), region = 82 }
 0x164   :  { %492 = vsyncpa [#allocation3], 1 }
 0x165   :  { %494 = vsyncpa [#allocation3 + $0x1], 1 }
 0x166   :  { %495 = vsyncpa [#allocation6], 1 }
 0x167   :  { %497 = vsyncpa [#allocation6 + $0x1], 1 }
 0x168   :  { %498 = vsyncpa [#allocation4], 1 }
 0x169   :  { %500 = vsyncpa [#allocation4 + $0x1], 1 }

</bundles_post_ra>
